<compile_context>
chip_gen: v6e
topology: v6e:2x2x1
jax: 0.10.0
libtpu: 0.0.40
codegen_flags: <defaults>
</compile_context>

<pallas_src>
import jax
import jax.numpy as jnp
import numpy as np
from jax import lax
from jax.experimental import pallas as pl
from jax.experimental.pallas import tpu as pltpu


# ----------------------------- Pallas kernel ------------------------------- #
def tagger_kernel(emb_ref, w_in_ref, b_in_ref, w_rec_ref, w_out_ref, b_out_ref,
                  out_ref,
                  gates_ref, hcat_ref):
    T = emb_ref.shape[0]
    H2 = hcat_ref.shape[1]          # 2H  ([h_fwd | h_bwd])
    H = H2 // 2

    # Fused input projection for BOTH directions, whole sequence at once (MXU).
    # Row s already holds the direction-correct mix: forward gate columns computed
    # from emb[s], backward gate columns from emb[T-1-s] (selection was baked into
    # the stacked embedding + block-structured weight in the wrapper), so the serial
    # loop below contains no select/where at all.
    gates_ref[...] = (jnp.dot(emb_ref[...], w_in_ref[...],
                              preferred_element_type=jnp.float32) + b_in_ref[...])

    w_rec = w_rec_ref[...]          # (2H, 8H) block-diagonal recurrent weight (hoisted)

    # Interleaved fwd/bwd recurrence, fully unrolled (T static) -> static slices,
    # full LLO scheduling visibility across steps.
    h = jnp.zeros((1, H2), jnp.float32)      # [h_f | h_b]
    c = jnp.zeros((1, H2), jnp.float32)      # [c_f | c_b]
    for s in range(T):
        # One wide matmul drives both directions' recurrent contribution.
        g = gates_ref[s:s + 1, :] + jnp.dot(h, w_rec,
                                            preferred_element_type=jnp.float32)  # (1, 8H)

        sig = jax.nn.sigmoid(g[:, 0:6 * H])      # [i_f,i_b,f_f,f_b,o_f,o_b]
        g_g = jnp.tanh(g[:, 6 * H:8 * H])        # [g_f,g_b]
        i_g = sig[:, 0:2 * H]
        f_g = sig[:, 2 * H:4 * H]
        o_g = sig[:, 4 * H:6 * H]

        c = f_g * c + i_g * g_g
        h = o_g * jnp.tanh(c)

        # Forward hidden goes to time s, backward hidden to time T-1-s.
        t_b = T - 1 - s
        hcat_ref[s:s + 1, 0:H] = h[:, 0:H]
        hcat_ref[t_b:t_b + 1, H:2 * H] = h[:, H:2 * H]

    # Fused linear1∘linear2 (no nonlinearity between them in the torch model);
    # output width padded to 128 lanes -> single unmasked lane-dense store.
    out_ref[...] = (jnp.dot(hcat_ref[...], w_out_ref[...],
                            preferred_element_type=jnp.float32) + b_out_ref[...])


# --------------------------- parameter fusion ------------------------------- #
def _permute_gate_cols(m_f, m_b, H):
    """(..., 4H) per-direction PyTorch gate order [i|f|g|o] ->
       (..., 8H) fused layout [i_f,i_b,f_f,f_b,o_f,o_b,g_f,g_b]."""
    bf = [m_f[..., k * H:(k + 1) * H] for k in range(4)]   # i, f, g, o
    bb = [m_b[..., k * H:(k + 1) * H] for k in range(4)]
    return jnp.concatenate(
        [bf[0], bb[0], bf[1], bb[1], bf[3], bb[3], bf[2], bb[2]], axis=-1)


def fuse_params(params, lane_pad=128):
    """One-time (wrapper-side) fusion of the PyTorch-layout parameters."""
    H = params["whh_f"].shape[0]
    num_tags = params["b2"].shape[1]

    # Stacked input projection: rows 0:E drive ONLY the forward gate columns,
    # rows E:2E drive ONLY the backward gate columns.  Paired with the stacked
    # embedding [emb[s] | emb[T-1-s]] this bakes direction selection into the matmul.
    zeros_ih = jnp.zeros_like(params["wih_f"])                        # (E, 4H)
    w_in = jnp.concatenate(
        [_permute_gate_cols(params["wih_f"], zeros_ih, H),
         _permute_gate_cols(zeros_ih, params["wih_b"], H)], axis=0)   # (2E, 8H)
    b_in = _permute_gate_cols(params["b_f"], params["b_b"], H)        # (1, 8H)

    # Block-diagonal recurrent weight: rows 0:H = h_f, rows H:2H = h_b.
    zeros_hh = jnp.zeros_like(params["whh_f"])                        # (H, 4H)
    whh_f_pad = jnp.concatenate([params["whh_f"], zeros_hh], axis=0)  # (2H, 4H)
    whh_b_pad = jnp.concatenate([zeros_hh, params["whh_b"]], axis=0)  # (2H, 4H)
    w_rec = _permute_gate_cols(whh_f_pad, whh_b_pad, H)               # (2H, 8H)

    # linear2(linear1(x)) with no nonlinearity -> single affine map; pad to 128 lanes.
    w_out = params["w1"] @ params["w2"]                               # (2H, numTags)
    b_out = params["b1"] @ params["w2"] + params["b2"]                # (1, numTags)
    ntp = max(lane_pad, ((num_tags + lane_pad - 1) // lane_pad) * lane_pad)
    w_out = jnp.pad(w_out, ((0, 0), (0, ntp - num_tags)))
    b_out = jnp.pad(b_out, ((0, 0), (0, ntp - num_tags)))

    return {
        "emb_table": params["emb_table"],
        "w_in": w_in, "b_in": b_in, "w_rec": w_rec,
        "w_out": w_out, "b_out": b_out,
        "num_tags": int(num_tags),
    }


# ------------------------------ wrapper ------------------------------------ #
def tagger_forward(sentence, fp):
    # glue: embedding gather + time-reversal stacking stay in plain JAX
    emb = fp["emb_table"][sentence]                      # (T, E) f32
    emb2 = jnp.concatenate([emb, emb[::-1]], axis=1)     # (T, 2E) = [emb[s] | emb[T-1-s]]
    T = emb2.shape[0]
    H2 = fp["w_rec"].shape[0]                            # 2H
    G = fp["w_in"].shape[1]                              # 8H
    NTP = fp["w_out"].shape[1]                           # padded tag width (128)
    vmem = pl.BlockSpec(memory_space=pltpu.MemorySpace.VMEM)
    out = pl.pallas_call(
        tagger_kernel,
        out_shape=jax.ShapeDtypeStruct((T, NTP), jnp.float32),
        in_specs=[vmem] * 6,
        out_specs=vmem,
        scratch_shapes=[
            pltpu.VMEM((T, G), jnp.float32),    # direction-selected fused gate pre-acts
            pltpu.VMEM((T, H2), jnp.float32),   # [h_fwd | h_bwd] hidden states
        ],
    )(emb2, fp["w_in"], fp["b_in"], fp["w_rec"], fp["w_out"], fp["b_out"])
    return out[:, :fp["num_tags"]]


# --------------------------- pure-JAX reference ----------------------------- #
def _lstm_dir_ref(x, wih, whh, b, reverse):
    H = whh.shape[0]
    xs = x[::-1] if reverse else x

    def step(carry, x_t):
        h, c = carry
        g = x_t @ wih + h @ whh + b[0]
        i_g = jax.nn.sigmoid(g[0:H])
        f_g = jax.nn.sigmoid(g[H:2 * H])
        g_g = jnp.tanh(g[2 * H:3 * H])
        o_g = jax.nn.sigmoid(g[3 * H:4 * H])
        c_new = f_g * c + i_g * g_g
        h_new = o_g * jnp.tanh(c_new)
        return (h_new, c_new), h_new

    h0 = jnp.zeros((H,), jnp.float32)
    c0 = jnp.zeros((H,), jnp.float32)
    _, hs = lax.scan(step, (h0, c0), xs)
    return hs[::-1] if reverse else hs                    # (T, H)


def reference_forward(sentence, params):
    emb = params["emb_table"][sentence]
    hf = _lstm_dir_ref(emb, params["wih_f"], params["whh_f"], params["b_f"], False)
    hb = _lstm_dir_ref(emb, params["wih_b"], params["whh_b"], params["b_b"], True)
    hcat = jnp.concatenate([hf, hb], axis=-1)
    z1 = hcat @ params["w1"] + params["b1"]
    return z1 @ params["w2"] + params["b2"]


# ------------------------------ parameters ---------------------------------- #
def init_params(key, num_words, num_tags, emb_size, rnn_size, hidden_size):
    ks = jax.random.split(key, 12)

    def u(k, shape, scale):
        return jax.random.uniform(k, shape, jnp.float32, -scale, scale)

    s_r = 1.0 / np.sqrt(rnn_size)
    s_1 = 1.0 / np.sqrt(2 * rnn_size)
    s_2 = 1.0 / np.sqrt(hidden_size)
    return {
        "emb_table": jax.random.normal(ks[0], (num_words + 1, emb_size), jnp.float32),
        # LSTM weights stored pre-transposed: (in, 4H) so x @ W gives gate pre-acts,
        # PyTorch gate order [i|f|g|o] along the last dim.
        "wih_f": u(ks[1], (emb_size, 4 * rnn_size), s_r),
        "whh_f": u(ks[2], (rnn_size, 4 * rnn_size), s_r),
        "b_f":   u(ks[3], (1, 4 * rnn_size), s_r),       # = b_ih + b_hh (combined)
        "wih_b": u(ks[4], (emb_size, 4 * rnn_size), s_r),
        "whh_b": u(ks[5], (rnn_size, 4 * rnn_size), s_r),
        "b_b":   u(ks[6], (1, 4 * rnn_size), s_r),
        "w1":    u(ks[7], (2 * rnn_size, hidden_size), s_1),
        "b1":    u(ks[8], (1, hidden_size), s_1),
        "w2":    u(ks[9], (hidden_size, num_tags), s_2),
        "b2":    u(ks[10], (1, num_tags), s_2),
    }


# --------------------------------- main -------------------------------------- #
if __name__ == "__main__":
    numWords, numTags = 100, 12
    embSize, rnnSize, hiddenSize = 16, 32, 32
    dropoutRate = 0.0            # dropout is identity at inference
    T = 8                        # sentence length

    key = jax.random.PRNGKey(0)
    pkey, skey = jax.random.split(key)
    params = init_params(pkey, numWords, numTags, embSize, rnnSize, hiddenSize)
    fused = fuse_params(params)  # one-time parameter fusion (wrapper-side)
    sentence = jax.random.randint(skey, (T,), 0, numWords + 1, dtype=jnp.int32)

    out = tagger_forward(sentence, fused)           # (T, numTags)
    out = jax.block_until_ready(out)

    ref = reference_forward(sentence, params)
    np.testing.assert_allclose(np.asarray(out), np.asarray(ref), rtol=2e-3, atol=2e-3)

    # annotate() equivalent (argmax over tag axis) — glue in plain JAX.
    _ = jax.block_until_ready(jnp.argmax(out, axis=1))

    print("KERNEL_OK")
</pallas_src>

<mosaic_0001>
module attributes {stable_mosaic.version = 11 : i64} {
  func.func @tagger_kernel(%arg0: memref<8x32xf32, #tpu.memory_space<vmem>>, %arg1: memref<32x256xf32, #tpu.memory_space<vmem>>, %arg2: memref<1x256xf32, #tpu.memory_space<vmem>>, %arg3: memref<64x256xf32, #tpu.memory_space<vmem>>, %arg4: memref<64x128xf32, #tpu.memory_space<vmem>>, %arg5: memref<1x128xf32, #tpu.memory_space<vmem>>, %arg6: memref<8x128xf32, #tpu.memory_space<vmem>>, %arg7: memref<8x256xf32, #tpu.memory_space<vmem>>, %arg8: memref<8x64xf32, #tpu.memory_space<vmem>>) attributes {dimension_semantics = [], scalar_prefetch = 0 : i64, scratch_operands = 2 : i64, tpu.core_type = #tpu.core_type<tc>} {
    %c0 = arith.constant 0 : index
    %c0_0 = arith.constant 0 : index
    %0 = vector.load %arg0[%c0, %c0_0] : memref<8x32xf32, #tpu.memory_space<vmem>>, vector<8x32xf32>
    %c0_1 = arith.constant 0 : index
    %c0_2 = arith.constant 0 : index
    %1 = vector.load %arg1[%c0_1, %c0_2] : memref<32x256xf32, #tpu.memory_space<vmem>>, vector<32x256xf32>
    %cst = arith.constant dense<0.000000e+00> : vector<8x256xf32>
    %2 = tpu.matmul %0, %1, %cst {dimension_numbers = #tpu.dot_dimension_numbers<[1], [0], [0], [1], [0, 0, 1, 1], [], []>} : vector<8x32xf32>, vector<32x256xf32>, vector<8x256xf32> -> vector<8x256xf32>
    %c0_3 = arith.constant 0 : index
    %c0_4 = arith.constant 0 : index
    %3 = vector.load %arg2[%c0_3, %c0_4] : memref<1x256xf32, #tpu.memory_space<vmem>>, vector<1x256xf32>
    %4 = vector.broadcast %3 : vector<1x256xf32> to vector<8x256xf32>
    %5 = arith.addf %2, %4 : vector<8x256xf32>
    %c0_5 = arith.constant 0 : index
    %c0_6 = arith.constant 0 : index
    %6 = vector.load %arg7[%c0_5, %c0_6] : memref<8x256xf32, #tpu.memory_space<vmem>>, vector<8x256xf32>
    tpu.vector_store %arg7[%c0_5, %c0_6], %5 {strides = array<i32>} : memref<8x256xf32, #tpu.memory_space<vmem>>, vector<8x256xf32>,
    %c0_7 = arith.constant 0 : index
    %c0_8 = arith.constant 0 : index
    %7 = vector.load %arg3[%c0_7, %c0_8] : memref<64x256xf32, #tpu.memory_space<vmem>>, vector<64x256xf32>
    %cst_9 = arith.constant 0.000000e+00 : f32
    %8 = vector.broadcast %cst_9 : f32 to vector<1x64xf32>
    %cst_10 = arith.constant 0.000000e+00 : f32
    %9 = vector.broadcast %cst_10 : f32 to vector<1x64xf32>
    %c0_11 = arith.constant 0 : index
    %c0_12 = arith.constant 0 : index
    %10 = vector.load %arg7[%c0_11, %c0_12] : memref<8x256xf32, #tpu.memory_space<vmem>>, vector<1x256xf32>
    %cst_13 = arith.constant dense<0.000000e+00> : vector<1x256xf32>
    %11 = tpu.matmul %8, %7, %cst_13 {dimension_numbers = #tpu.dot_dimension_numbers<[1], [0], [0], [1], [0, 0, 1, 1], [], []>} : vector<1x64xf32>, vector<64x256xf32>, vector<1x256xf32> -> vector<1x256xf32>
    %12 = arith.addf %10, %11 : vector<1x256xf32>
    %13 = vector.extract_strided_slice %12 {offsets = [0, 0], sizes = [1, 192], strides = [1, 1]} : vector<1x256xf32> to vector<1x192xf32>
    %14 = arith.negf %13 : vector<1x192xf32>
    %15 = math.exp %14 : vector<1x192xf32>
    %cst_14 = arith.constant 1.000000e+00 : f32
    %16 = vector.broadcast %cst_14 : f32 to vector<1x192xf32>
    %17 = arith.addf %16, %15 : vector<1x192xf32>
    %18 = arith.divf %16, %17 : vector<1x192xf32>
    %19 = vector.extract_strided_slice %12 {offsets = [0, 192], sizes = [1, 64], strides = [1, 1]} : vector<1x256xf32> to vector<1x64xf32>
    %20 = math.tanh %19 : vector<1x64xf32>
    %21 = vector.extract_strided_slice %18 {offsets = [0, 0], sizes = [1, 64], strides = [1, 1]} : vector<1x192xf32> to vector<1x64xf32>
    %22 = vector.extract_strided_slice %18 {offsets = [0, 64], sizes = [1, 64], strides = [1, 1]} : vector<1x192xf32> to vector<1x64xf32>
    %23 = vector.extract_strided_slice %18 {offsets = [0, 128], sizes = [1, 64], strides = [1, 1]} : vector<1x192xf32> to vector<1x64xf32>
    %24 = arith.mulf %22, %9 : vector<1x64xf32>
    %25 = arith.mulf %21, %20 : vector<1x64xf32>
    %26 = arith.addf %24, %25 : vector<1x64xf32>
    %27 = math.tanh %26 : vector<1x64xf32>
    %28 = arith.mulf %23, %27 : vector<1x64xf32>
    %29 = vector.extract_strided_slice %28 {offsets = [0, 0], sizes = [1, 32], strides = [1, 1]} : vector<1x64xf32> to vector<1x32xf32>
    %c0_15 = arith.constant 0 : index
    %c0_16 = arith.constant 0 : index
    %30 = vector.load %arg8[%c0_15, %c0_16] : memref<8x64xf32, #tpu.memory_space<vmem>>, vector<1x32xf32>
    tpu.vector_store %arg8[%c0_15, %c0_16], %29 {strides = array<i32>} : memref<8x64xf32, #tpu.memory_space<vmem>>, vector<1x32xf32>,
    %31 = vector.extract_strided_slice %28 {offsets = [0, 32], sizes = [1, 32], strides = [1, 1]} : vector<1x64xf32> to vector<1x32xf32>
    %c7 = arith.constant 7 : index
    %c32 = arith.constant 32 : index
    %32 = vector.load %arg8[%c7, %c32] : memref<8x64xf32, #tpu.memory_space<vmem>>, vector<1x32xf32>
    tpu.vector_store %arg8[%c7, %c32], %31 {strides = array<i32>} : memref<8x64xf32, #tpu.memory_space<vmem>>, vector<1x32xf32>,
    %c1 = arith.constant 1 : index
    %c0_17 = arith.constant 0 : index
    %33 = vector.load %arg7[%c1, %c0_17] : memref<8x256xf32, #tpu.memory_space<vmem>>, vector<1x256xf32>
    %cst_18 = arith.constant dense<0.000000e+00> : vector<1x256xf32>
    %34 = tpu.matmul %28, %7, %cst_18 {dimension_numbers = #tpu.dot_dimension_numbers<[1], [0], [0], [1], [0, 0, 1, 1], [], []>} : vector<1x64xf32>, vector<64x256xf32>, vector<1x256xf32> -> vector<1x256xf32>
    %35 = arith.addf %33, %34 : vector<1x256xf32>
    %36 = vector.extract_strided_slice %35 {offsets = [0, 0], sizes = [1, 192], strides = [1, 1]} : vector<1x256xf32> to vector<1x192xf32>
    %37 = arith.negf %36 : vector<1x192xf32>
    %38 = math.exp %37 : vector<1x192xf32>
    %cst_19 = arith.constant 1.000000e+00 : f32
    %39 = vector.broadcast %cst_19 : f32 to vector<1x192xf32>
    %40 = arith.addf %39, %38 : vector<1x192xf32>
    %41 = arith.divf %39, %40 : vector<1x192xf32>
    %42 = vector.extract_strided_slice %35 {offsets = [0, 192], sizes = [1, 64], strides = [1, 1]} : vector<1x256xf32> to vector<1x64xf32>
    %43 = math.tanh %42 : vector<1x64xf32>
    %44 = vector.extract_strided_slice %41 {offsets = [0, 0], sizes = [1, 64], strides = [1, 1]} : vector<1x192xf32> to vector<1x64xf32>
    %45 = vector.extract_strided_slice %41 {offsets = [0, 64], sizes = [1, 64], strides = [1, 1]} : vector<1x192xf32> to vector<1x64xf32>
    %46 = vector.extract_strided_slice %41 {offsets = [0, 128], sizes = [1, 64], strides = [1, 1]} : vector<1x192xf32> to vector<1x64xf32>
    %47 = arith.mulf %45, %26 : vector<1x64xf32>
    %48 = arith.mulf %44, %43 : vector<1x64xf32>
    %49 = arith.addf %47, %48 : vector<1x64xf32>
    %50 = math.tanh %49 : vector<1x64xf32>
    %51 = arith.mulf %46, %50 : vector<1x64xf32>
    %52 = vector.extract_strided_slice %51 {offsets = [0, 0], sizes = [1, 32], strides = [1, 1]} : vector<1x64xf32> to vector<1x32xf32>
    %c1_20 = arith.constant 1 : index
    %c0_21 = arith.constant 0 : index
    %53 = vector.load %arg8[%c1_20, %c0_21] : memref<8x64xf32, #tpu.memory_space<vmem>>, vector<1x32xf32>
    tpu.vector_store %arg8[%c1_20, %c0_21], %52 {strides = array<i32>} : memref<8x64xf32, #tpu.memory_space<vmem>>, vector<1x32xf32>,
    %54 = vector.extract_strided_slice %51 {offsets = [0, 32], sizes = [1, 32], strides = [1, 1]} : vector<1x64xf32> to vector<1x32xf32>
    %c6 = arith.constant 6 : index
    %c32_22 = arith.constant 32 : index
    %55 = vector.load %arg8[%c6, %c32_22] : memref<8x64xf32, #tpu.memory_space<vmem>>, vector<1x32xf32>
    tpu.vector_store %arg8[%c6, %c32_22], %54 {strides = array<i32>} : memref<8x64xf32, #tpu.memory_space<vmem>>, vector<1x32xf32>,
    %c2 = arith.constant 2 : index
    %c0_23 = arith.constant 0 : index
    %56 = vector.load %arg7[%c2, %c0_23] : memref<8x256xf32, #tpu.memory_space<vmem>>, vector<1x256xf32>
    %cst_24 = arith.constant dense<0.000000e+00> : vector<1x256xf32>
    %57 = tpu.matmul %51, %7, %cst_24 {dimension_numbers = #tpu.dot_dimension_numbers<[1], [0], [0], [1], [0, 0, 1, 1], [], []>} : vector<1x64xf32>, vector<64x256xf32>, vector<1x256xf32> -> vector<1x256xf32>
    %58 = arith.addf %56, %57 : vector<1x256xf32>
    %59 = vector.extract_strided_slice %58 {offsets = [0, 0], sizes = [1, 192], strides = [1, 1]} : vector<1x256xf32> to vector<1x192xf32>
    %60 = arith.negf %59 : vector<1x192xf32>
    %61 = math.exp %60 : vector<1x192xf32>
    %cst_25 = arith.constant 1.000000e+00 : f32
    %62 = vector.broadcast %cst_25 : f32 to vector<1x192xf32>
    %63 = arith.addf %62, %61 : vector<1x192xf32>
    %64 = arith.divf %62, %63 : vector<1x192xf32>
    %65 = vector.extract_strided_slice %58 {offsets = [0, 192], sizes = [1, 64], strides = [1, 1]} : vector<1x256xf32> to vector<1x64xf32>
    %66 = math.tanh %65 : vector<1x64xf32>
    %67 = vector.extract_strided_slice %64 {offsets = [0, 0], sizes = [1, 64], strides = [1, 1]} : vector<1x192xf32> to vector<1x64xf32>
    %68 = vector.extract_strided_slice %64 {offsets = [0, 64], sizes = [1, 64], strides = [1, 1]} : vector<1x192xf32> to vector<1x64xf32>
    %69 = vector.extract_strided_slice %64 {offsets = [0, 128], sizes = [1, 64], strides = [1, 1]} : vector<1x192xf32> to vector<1x64xf32>
    %70 = arith.mulf %68, %49 : vector<1x64xf32>
    %71 = arith.mulf %67, %66 : vector<1x64xf32>
    %72 = arith.addf %70, %71 : vector<1x64xf32>
    %73 = math.tanh %72 : vector<1x64xf32>
    %74 = arith.mulf %69, %73 : vector<1x64xf32>
    %75 = vector.extract_strided_slice %74 {offsets = [0, 0], sizes = [1, 32], strides = [1, 1]} : vector<1x64xf32> to vector<1x32xf32>
    %c2_26 = arith.constant 2 : index
    %c0_27 = arith.constant 0 : index
    %76 = vector.load %arg8[%c2_26, %c0_27] : memref<8x64xf32, #tpu.memory_space<vmem>>, vector<1x32xf32>
    tpu.vector_store %arg8[%c2_26, %c0_27], %75 {strides = array<i32>} : memref<8x64xf32, #tpu.memory_space<vmem>>, vector<1x32xf32>,
    %77 = vector.extract_strided_slice %74 {offsets = [0, 32], sizes = [1, 32], strides = [1, 1]} : vector<1x64xf32> to vector<1x32xf32>
    %c5 = arith.constant 5 : index
    %c32_28 = arith.constant 32 : index
    %78 = vector.load %arg8[%c5, %c32_28] : memref<8x64xf32, #tpu.memory_space<vmem>>, vector<1x32xf32>
    tpu.vector_store %arg8[%c5, %c32_28], %77 {strides = array<i32>} : memref<8x64xf32, #tpu.memory_space<vmem>>, vector<1x32xf32>,
    %c3 = arith.constant 3 : index
    %c0_29 = arith.constant 0 : index
    %79 = vector.load %arg7[%c3, %c0_29] : memref<8x256xf32, #tpu.memory_space<vmem>>, vector<1x256xf32>
    %cst_30 = arith.constant dense<0.000000e+00> : vector<1x256xf32>
    %80 = tpu.matmul %74, %7, %cst_30 {dimension_numbers = #tpu.dot_dimension_numbers<[1], [0], [0], [1], [0, 0, 1, 1], [], []>} : vector<1x64xf32>, vector<64x256xf32>, vector<1x256xf32> -> vector<1x256xf32>
    %81 = arith.addf %79, %80 : vector<1x256xf32>
    %82 = vector.extract_strided_slice %81 {offsets = [0, 0], sizes = [1, 192], strides = [1, 1]} : vector<1x256xf32> to vector<1x192xf32>
    %83 = arith.negf %82 : vector<1x192xf32>
    %84 = math.exp %83 : vector<1x192xf32>
    %cst_31 = arith.constant 1.000000e+00 : f32
    %85 = vector.broadcast %cst_31 : f32 to vector<1x192xf32>
    %86 = arith.addf %85, %84 : vector<1x192xf32>
    %87 = arith.divf %85, %86 : vector<1x192xf32>
    %88 = vector.extract_strided_slice %81 {offsets = [0, 192], sizes = [1, 64], strides = [1, 1]} : vector<1x256xf32> to vector<1x64xf32>
    %89 = math.tanh %88 : vector<1x64xf32>
    %90 = vector.extract_strided_slice %87 {offsets = [0, 0], sizes = [1, 64], strides = [1, 1]} : vector<1x192xf32> to vector<1x64xf32>
    %91 = vector.extract_strided_slice %87 {offsets = [0, 64], sizes = [1, 64], strides = [1, 1]} : vector<1x192xf32> to vector<1x64xf32>
    %92 = vector.extract_strided_slice %87 {offsets = [0, 128], sizes = [1, 64], strides = [1, 1]} : vector<1x192xf32> to vector<1x64xf32>
    %93 = arith.mulf %91, %72 : vector<1x64xf32>
    %94 = arith.mulf %90, %89 : vector<1x64xf32>
    %95 = arith.addf %93, %94 : vector<1x64xf32>
    %96 = math.tanh %95 : vector<1x64xf32>
    %97 = arith.mulf %92, %96 : vector<1x64xf32>
    %98 = vector.extract_strided_slice %97 {offsets = [0, 0], sizes = [1, 32], strides = [1, 1]} : vector<1x64xf32> to vector<1x32xf32>
    %c3_32 = arith.constant 3 : index
    %c0_33 = arith.constant 0 : index
    %99 = vector.load %arg8[%c3_32, %c0_33] : memref<8x64xf32, #tpu.memory_space<vmem>>, vector<1x32xf32>
    tpu.vector_store %arg8[%c3_32, %c0_33], %98 {strides = array<i32>} : memref<8x64xf32, #tpu.memory_space<vmem>>, vector<1x32xf32>,
    %100 = vector.extract_strided_slice %97 {offsets = [0, 32], sizes = [1, 32], strides = [1, 1]} : vector<1x64xf32> to vector<1x32xf32>
    %c4 = arith.constant 4 : index
    %c32_34 = arith.constant 32 : index
    %101 = vector.load %arg8[%c4, %c32_34] : memref<8x64xf32, #tpu.memory_space<vmem>>, vector<1x32xf32>
    tpu.vector_store %arg8[%c4, %c32_34], %100 {strides = array<i32>} : memref<8x64xf32, #tpu.memory_space<vmem>>, vector<1x32xf32>,
    %c4_35 = arith.constant 4 : index
    %c0_36 = arith.constant 0 : index
    %102 = vector.load %arg7[%c4_35, %c0_36] : memref<8x256xf32, #tpu.memory_space<vmem>>, vector<1x256xf32>
    %cst_37 = arith.constant dense<0.000000e+00> : vector<1x256xf32>
    %103 = tpu.matmul %97, %7, %cst_37 {dimension_numbers = #tpu.dot_dimension_numbers<[1], [0], [0], [1], [0, 0, 1, 1], [], []>} : vector<1x64xf32>, vector<64x256xf32>, vector<1x256xf32> -> vector<1x256xf32>
    %104 = arith.addf %102, %103 : vector<1x256xf32>
    %105 = vector.extract_strided_slice %104 {offsets = [0, 0], sizes = [1, 192], strides = [1, 1]} : vector<1x256xf32> to vector<1x192xf32>
    %106 = arith.negf %105 : vector<1x192xf32>
    %107 = math.exp %106 : vector<1x192xf32>
    %cst_38 = arith.constant 1.000000e+00 : f32
    %108 = vector.broadcast %cst_38 : f32 to vector<1x192xf32>
    %109 = arith.addf %108, %107 : vector<1x192xf32>
    %110 = arith.divf %108, %109 : vector<1x192xf32>
    %111 = vector.extract_strided_slice %104 {offsets = [0, 192], sizes = [1, 64], strides = [1, 1]} : vector<1x256xf32> to vector<1x64xf32>
    %112 = math.tanh %111 : vector<1x64xf32>
    %113 = vector.extract_strided_slice %110 {offsets = [0, 0], sizes = [1, 64], strides = [1, 1]} : vector<1x192xf32> to vector<1x64xf32>
    %114 = vector.extract_strided_slice %110 {offsets = [0, 64], sizes = [1, 64], strides = [1, 1]} : vector<1x192xf32> to vector<1x64xf32>
    %115 = vector.extract_strided_slice %110 {offsets = [0, 128], sizes = [1, 64], strides = [1, 1]} : vector<1x192xf32> to vector<1x64xf32>
    %116 = arith.mulf %114, %95 : vector<1x64xf32>
    %117 = arith.mulf %113, %112 : vector<1x64xf32>
    %118 = arith.addf %116, %117 : vector<1x64xf32>
    %119 = math.tanh %118 : vector<1x64xf32>
    %120 = arith.mulf %115, %119 : vector<1x64xf32>
    %121 = vector.extract_strided_slice %120 {offsets = [0, 0], sizes = [1, 32], strides = [1, 1]} : vector<1x64xf32> to vector<1x32xf32>
    %c4_39 = arith.constant 4 : index
    %c0_40 = arith.constant 0 : index
    %122 = vector.load %arg8[%c4_39, %c0_40] : memref<8x64xf32, #tpu.memory_space<vmem>>, vector<1x32xf32>
    tpu.vector_store %arg8[%c4_39, %c0_40], %121 {strides = array<i32>} : memref<8x64xf32, #tpu.memory_space<vmem>>, vector<1x32xf32>,
    %123 = vector.extract_strided_slice %120 {offsets = [0, 32], sizes = [1, 32], strides = [1, 1]} : vector<1x64xf32> to vector<1x32xf32>
    %c3_41 = arith.constant 3 : index
    %c32_42 = arith.constant 32 : index
    %124 = vector.load %arg8[%c3_41, %c32_42] : memref<8x64xf32, #tpu.memory_space<vmem>>, vector<1x32xf32>
    tpu.vector_store %arg8[%c3_41, %c32_42], %123 {strides = array<i32>} : memref<8x64xf32, #tpu.memory_space<vmem>>, vector<1x32xf32>,
    %c5_43 = arith.constant 5 : index
    %c0_44 = arith.constant 0 : index
    %125 = vector.load %arg7[%c5_43, %c0_44] : memref<8x256xf32, #tpu.memory_space<vmem>>, vector<1x256xf32>
    %cst_45 = arith.constant dense<0.000000e+00> : vector<1x256xf32>
    %126 = tpu.matmul %120, %7, %cst_45 {dimension_numbers = #tpu.dot_dimension_numbers<[1], [0], [0], [1], [0, 0, 1, 1], [], []>} : vector<1x64xf32>, vector<64x256xf32>, vector<1x256xf32> -> vector<1x256xf32>
    %127 = arith.addf %125, %126 : vector<1x256xf32>
    %128 = vector.extract_strided_slice %127 {offsets = [0, 0], sizes = [1, 192], strides = [1, 1]} : vector<1x256xf32> to vector<1x192xf32>
    %129 = arith.negf %128 : vector<1x192xf32>
    %130 = math.exp %129 : vector<1x192xf32>
    %cst_46 = arith.constant 1.000000e+00 : f32
    %131 = vector.broadcast %cst_46 : f32 to vector<1x192xf32>
    %132 = arith.addf %131, %130 : vector<1x192xf32>
    %133 = arith.divf %131, %132 : vector<1x192xf32>
    %134 = vector.extract_strided_slice %127 {offsets = [0, 192], sizes = [1, 64], strides = [1, 1]} : vector<1x256xf32> to vector<1x64xf32>
    %135 = math.tanh %134 : vector<1x64xf32>
    %136 = vector.extract_strided_slice %133 {offsets = [0, 0], sizes = [1, 64], strides = [1, 1]} : vector<1x192xf32> to vector<1x64xf32>
    %137 = vector.extract_strided_slice %133 {offsets = [0, 64], sizes = [1, 64], strides = [1, 1]} : vector<1x192xf32> to vector<1x64xf32>
    %138 = vector.extract_strided_slice %133 {offsets = [0, 128], sizes = [1, 64], strides = [1, 1]} : vector<1x192xf32> to vector<1x64xf32>
    %139 = arith.mulf %137, %118 : vector<1x64xf32>
    %140 = arith.mulf %136, %135 : vector<1x64xf32>
    %141 = arith.addf %139, %140 : vector<1x64xf32>
    %142 = math.tanh %141 : vector<1x64xf32>
    %143 = arith.mulf %138, %142 : vector<1x64xf32>
    %144 = vector.extract_strided_slice %143 {offsets = [0, 0], sizes = [1, 32], strides = [1, 1]} : vector<1x64xf32> to vector<1x32xf32>
    %c5_47 = arith.constant 5 : index
    %c0_48 = arith.constant 0 : index
    %145 = vector.load %arg8[%c5_47, %c0_48] : memref<8x64xf32, #tpu.memory_space<vmem>>, vector<1x32xf32>
    tpu.vector_store %arg8[%c5_47, %c0_48], %144 {strides = array<i32>} : memref<8x64xf32, #tpu.memory_space<vmem>>, vector<1x32xf32>,
    %146 = vector.extract_strided_slice %143 {offsets = [0, 32], sizes = [1, 32], strides = [1, 1]} : vector<1x64xf32> to vector<1x32xf32>
    %c2_49 = arith.constant 2 : index
    %c32_50 = arith.constant 32 : index
    %147 = vector.load %arg8[%c2_49, %c32_50] : memref<8x64xf32, #tpu.memory_space<vmem>>, vector<1x32xf32>
    tpu.vector_store %arg8[%c2_49, %c32_50], %146 {strides = array<i32>} : memref<8x64xf32, #tpu.memory_space<vmem>>, vector<1x32xf32>,
    %c6_51 = arith.constant 6 : index
    %c0_52 = arith.constant 0 : index
    %148 = vector.load %arg7[%c6_51, %c0_52] : memref<8x256xf32, #tpu.memory_space<vmem>>, vector<1x256xf32>
    %cst_53 = arith.constant dense<0.000000e+00> : vector<1x256xf32>
    %149 = tpu.matmul %143, %7, %cst_53 {dimension_numbers = #tpu.dot_dimension_numbers<[1], [0], [0], [1], [0, 0, 1, 1], [], []>} : vector<1x64xf32>, vector<64x256xf32>, vector<1x256xf32> -> vector<1x256xf32>
    %150 = arith.addf %148, %149 : vector<1x256xf32>
    %151 = vector.extract_strided_slice %150 {offsets = [0, 0], sizes = [1, 192], strides = [1, 1]} : vector<1x256xf32> to vector<1x192xf32>
    %152 = arith.negf %151 : vector<1x192xf32>
    %153 = math.exp %152 : vector<1x192xf32>
    %cst_54 = arith.constant 1.000000e+00 : f32
    %154 = vector.broadcast %cst_54 : f32 to vector<1x192xf32>
    %155 = arith.addf %154, %153 : vector<1x192xf32>
    %156 = arith.divf %154, %155 : vector<1x192xf32>
    %157 = vector.extract_strided_slice %150 {offsets = [0, 192], sizes = [1, 64], strides = [1, 1]} : vector<1x256xf32> to vector<1x64xf32>
    %158 = math.tanh %157 : vector<1x64xf32>
    %159 = vector.extract_strided_slice %156 {offsets = [0, 0], sizes = [1, 64], strides = [1, 1]} : vector<1x192xf32> to vector<1x64xf32>
    %160 = vector.extract_strided_slice %156 {offsets = [0, 64], sizes = [1, 64], strides = [1, 1]} : vector<1x192xf32> to vector<1x64xf32>
    %161 = vector.extract_strided_slice %156 {offsets = [0, 128], sizes = [1, 64], strides = [1, 1]} : vector<1x192xf32> to vector<1x64xf32>
    %162 = arith.mulf %160, %141 : vector<1x64xf32>
    %163 = arith.mulf %159, %158 : vector<1x64xf32>
    %164 = arith.addf %162, %163 : vector<1x64xf32>
    %165 = math.tanh %164 : vector<1x64xf32>
    %166 = arith.mulf %161, %165 : vector<1x64xf32>
    %167 = vector.extract_strided_slice %166 {offsets = [0, 0], sizes = [1, 32], strides = [1, 1]} : vector<1x64xf32> to vector<1x32xf32>
    %c6_55 = arith.constant 6 : index
    %c0_56 = arith.constant 0 : index
    %168 = vector.load %arg8[%c6_55, %c0_56] : memref<8x64xf32, #tpu.memory_space<vmem>>, vector<1x32xf32>
    tpu.vector_store %arg8[%c6_55, %c0_56], %167 {strides = array<i32>} : memref<8x64xf32, #tpu.memory_space<vmem>>, vector<1x32xf32>,
    %169 = vector.extract_strided_slice %166 {offsets = [0, 32], sizes = [1, 32], strides = [1, 1]} : vector<1x64xf32> to vector<1x32xf32>
    %c1_57 = arith.constant 1 : index
    %c32_58 = arith.constant 32 : index
    %170 = vector.load %arg8[%c1_57, %c32_58] : memref<8x64xf32, #tpu.memory_space<vmem>>, vector<1x32xf32>
    tpu.vector_store %arg8[%c1_57, %c32_58], %169 {strides = array<i32>} : memref<8x64xf32, #tpu.memory_space<vmem>>, vector<1x32xf32>,
    %c7_59 = arith.constant 7 : index
    %c0_60 = arith.constant 0 : index
    %171 = vector.load %arg7[%c7_59, %c0_60] : memref<8x256xf32, #tpu.memory_space<vmem>>, vector<1x256xf32>
    %cst_61 = arith.constant dense<0.000000e+00> : vector<1x256xf32>
    %172 = tpu.matmul %166, %7, %cst_61 {dimension_numbers = #tpu.dot_dimension_numbers<[1], [0], [0], [1], [0, 0, 1, 1], [], []>} : vector<1x64xf32>, vector<64x256xf32>, vector<1x256xf32> -> vector<1x256xf32>
    %173 = arith.addf %171, %172 : vector<1x256xf32>
    %174 = vector.extract_strided_slice %173 {offsets = [0, 0], sizes = [1, 192], strides = [1, 1]} : vector<1x256xf32> to vector<1x192xf32>
    %175 = arith.negf %174 : vector<1x192xf32>
    %176 = math.exp %175 : vector<1x192xf32>
    %cst_62 = arith.constant 1.000000e+00 : f32
    %177 = vector.broadcast %cst_62 : f32 to vector<1x192xf32>
    %178 = arith.addf %177, %176 : vector<1x192xf32>
    %179 = arith.divf %177, %178 : vector<1x192xf32>
    %180 = vector.extract_strided_slice %173 {offsets = [0, 192], sizes = [1, 64], strides = [1, 1]} : vector<1x256xf32> to vector<1x64xf32>
    %181 = math.tanh %180 : vector<1x64xf32>
    %182 = vector.extract_strided_slice %179 {offsets = [0, 0], sizes = [1, 64], strides = [1, 1]} : vector<1x192xf32> to vector<1x64xf32>
    %183 = vector.extract_strided_slice %179 {offsets = [0, 64], sizes = [1, 64], strides = [1, 1]} : vector<1x192xf32> to vector<1x64xf32>
    %184 = vector.extract_strided_slice %179 {offsets = [0, 128], sizes = [1, 64], strides = [1, 1]} : vector<1x192xf32> to vector<1x64xf32>
    %185 = arith.mulf %183, %164 : vector<1x64xf32>
    %186 = arith.mulf %182, %181 : vector<1x64xf32>
    %187 = arith.addf %185, %186 : vector<1x64xf32>
    %188 = math.tanh %187 : vector<1x64xf32>
    %189 = arith.mulf %184, %188 : vector<1x64xf32>
    %190 = vector.extract_strided_slice %189 {offsets = [0, 0], sizes = [1, 32], strides = [1, 1]} : vector<1x64xf32> to vector<1x32xf32>
    %c7_63 = arith.constant 7 : index
    %c0_64 = arith.constant 0 : index
    %191 = vector.load %arg8[%c7_63, %c0_64] : memref<8x64xf32, #tpu.memory_space<vmem>>, vector<1x32xf32>
    tpu.vector_store %arg8[%c7_63, %c0_64], %190 {strides = array<i32>} : memref<8x64xf32, #tpu.memory_space<vmem>>, vector<1x32xf32>,
    %192 = vector.extract_strided_slice %189 {offsets = [0, 32], sizes = [1, 32], strides = [1, 1]} : vector<1x64xf32> to vector<1x32xf32>
    %c0_65 = arith.constant 0 : index
    %c32_66 = arith.constant 32 : index
    %193 = vector.load %arg8[%c0_65, %c32_66] : memref<8x64xf32, #tpu.memory_space<vmem>>, vector<1x32xf32>
    tpu.vector_store %arg8[%c0_65, %c32_66], %192 {strides = array<i32>} : memref<8x64xf32, #tpu.memory_space<vmem>>, vector<1x32xf32>,
    %c0_67 = arith.constant 0 : index
    %c0_68 = arith.constant 0 : index
    %194 = vector.load %arg8[%c0_67, %c0_68] : memref<8x64xf32, #tpu.memory_space<vmem>>, vector<8x64xf32>
    %c0_69 = arith.constant 0 : index
    %c0_70 = arith.constant 0 : index
    %195 = vector.load %arg4[%c0_69, %c0_70] : memref<64x128xf32, #tpu.memory_space<vmem>>, vector<64x128xf32>
    %cst_71 = arith.constant dense<0.000000e+00> : vector<8x128xf32>
    %196 = tpu.matmul %194, %195, %cst_71 {dimension_numbers = #tpu.dot_dimension_numbers<[1], [0], [0], [1], [0, 0, 1, 1], [], []>} : vector<8x64xf32>, vector<64x128xf32>, vector<8x128xf32> -> vector<8x128xf32>
    %c0_72 = arith.constant 0 : index
    %c0_73 = arith.constant 0 : index
    %197 = vector.load %arg5[%c0_72, %c0_73] : memref<1x128xf32, #tpu.memory_space<vmem>>, vector<1x128xf32>
    %198 = vector.broadcast %197 : vector<1x128xf32> to vector<8x128xf32>
    %199 = arith.addf %196, %198 : vector<8x128xf32>
    %c0_74 = arith.constant 0 : index
    %c0_75 = arith.constant 0 : index
    %200 = vector.load %arg6[%c0_74, %c0_75] : memref<8x128xf32, #tpu.memory_space<vmem>>, vector<8x128xf32>
    tpu.vector_store %arg6[%c0_74, %c0_75], %199 {strides = array<i32>} : memref<8x128xf32, #tpu.memory_space<vmem>>, vector<8x128xf32>,
    return
  }
}

</mosaic_0001>

<bundles_post_ra>
// kernel: tpu_custom_call.1
= control target key start
LH: loop header
LB: loop body
LE: loop exit
PB: predicated region body
PF: predicated region fallthrough
CT: control target
= control target key end

     0   :  { %11 = vsyncpa [#allocation5], 0  ;;  %s1845_s0 = inlined_call_operand.hbm [shape: f32[8,32], index: 0, kind: input, shape index: {}]   ;;  %s1846_s1 = inlined_call_operand.hbm [shape: f32[32,256], index: 1, kind: input, shape index: {}]   ;;  %s1847_s2 = inlined_call_operand.vmem [shape: f32[1,256], index: 2, kind: input, shape index: {}]   ;;  %s1848_s3 = inlined_call_operand.hbm [shape: f32[64,256], index: 3, kind: input, shape index: {}]   ;;  %s1849_s4 = inlined_call_operand.hbm [shape: f32[64,128], index: 4, kind: input, shape index: {}]   ;;  %s1850_s5 = inlined_call_operand.vmem [shape: f32[1,128], index: 5, kind: input, shape index: {}]   ;;  %s1851_s6 = inlined_call_operand.hbm [shape: f32[8,128], index: 6, kind: output, shape index: {}]  }
   0x1   :  { %12 = vsyncpa [#allocation8], 0 }
   0x2   :  { %13 = vsyncpa [#allocation11], 0 }
   0x3   :  { %14 = vsyncpa [#allocation6], 0  ;;  %s1531_s21 = smov [#allocation7]  }
   0x4   :  { %s30_s22 = sshll.u32 %s1531_s21, 4  ;;  %s31_s22 = int_to_ptr.vmem [resolvable:$true] %s30_s22 }
   0x5   :  { %s1431_s23 = scalar_lea.vmem %s31_s22, 1024  ;;  %p1436_p1 = scmp.lt.s32.totalorder %s31_s22, %s31_s22 }
   0x6   :  { %p1432_p0 = scmp.ne.s32.totalorder %s31_s22, %s1431_s23  ;;  %p1437_p2 = scmp.lt.s32.totalorder %s1431_s23, %s1431_s23 }
   0x8   :  { %p1438_p3 = por %p1437_p2, %p1436_p1 }
   0xa   :  { %p1439_p4 = pnand %p1438_p3, %p1432_p0 }
   0xc   :  { %1442 = shalt.err (!%p1439_p4)
}
   0xd   :  { %s1532_s24 = smov 256   ;;  %s1533_s25 = smov 16  }
   0xe   :  { %36 = dma.hbm_to_vmem [thread:$0]  %s1846_s1, 1024, %s31_s22, [#allocation8], %s1532_s24, %s1532_s24, %s1533_s25  }
   0xf   :  { %s1534_s28 = smov [#allocation4]   ;;  %s1535_s30 = smov [#allocation9]  }
  0x10   :  { %s21_s29 = sshll.u32 %s1534_s28, 4  ;;  %s44_s7 = sshll.u32 %s1535_s30, 4  ;;  %s22_s29 = int_to_ptr.vmem [resolvable:$true] %s21_s29  ;;  %s45_s7 = int_to_ptr.vmem [resolvable:$true] %s44_s7 }
  0x11   :  { %s1451_s8 = scalar_lea.vmem %s22_s29, 128  ;;  %p1456_p6 = scmp.lt.s32.totalorder %s22_s29, %s22_s29 }
  0x12   :  { %p1452_p5 = scmp.ne.s32.totalorder %s22_s29, %s1451_s8  ;;  %p1457_p7 = scmp.lt.s32.totalorder %s1451_s8, %s1451_s8 }
  0x14   :  { %p1458_p8 = por %p1457_p7, %p1456_p6 }
  0x16   :  { %p1459_p9 = pnand %p1458_p8, %p1452_p5 }
  0x18   :  { %1462 = shalt.err (!%p1459_p9)
}
  0x19   :  { %24 = dma.hbm_to_vmem [thread:$0]  %s1845_s0, 128, %s22_s29, [#allocation5]  }
  0x1a   :  { %s1471_s11 = scalar_lea.vmem %s45_s7, 2048  ;;  %p1476_p11 = scmp.lt.s32.totalorder %s45_s7, %s45_s7 }
  0x1b   :  { %p1472_p10 = scmp.ne.s32.totalorder %s45_s7, %s1471_s11  ;;  %p1477_p12 = scmp.lt.s32.totalorder %s1471_s11, %s1471_s11 }
  0x1d   :  { %p1478_p13 = por %p1477_p12, %p1476_p11 }
  0x1f   :  { %p1479_p0 = pnand %p1478_p13, %p1472_p10 }
  0x21   :  { %1482 = shalt.err (!%p1479_p0)
}
  0x22   :  { %50 = dma.hbm_to_vmem [thread:$0]  %s1848_s3, 2048, %s45_s7, [#allocation8], %s1532_s24, %s1532_s24, %s1533_s25  }
  0x23   :  { %s1536_s13 = smov [#allocation10]  }
  0x24   :  { %s56_s14 = sshll.u32 %s1536_s13, 4  ;;  %s57_s14 = int_to_ptr.vmem [resolvable:$true] %s56_s14 }
  0x25   :  { %s1491_s15 = scalar_lea.vmem %s57_s14, 1024  ;;  %p1496_p2 = scmp.lt.s32.totalorder %s57_s14, %s57_s14 }
  0x26   :  { %p1492_p1 = scmp.ne.s32.totalorder %s57_s14, %s1491_s15  ;;  %p1497_p3 = scmp.lt.s32.totalorder %s1491_s15, %s1491_s15 }
  0x28   :  { %p1498_p4 = por %p1497_p3, %p1496_p2 }
  0x2a   :  { %p1499_p5 = pnand %p1498_p4, %p1492_p1 }
  0x2c   :  { %1502 = shalt.err (!%p1499_p5)
}
  0x2d   :  { %s1537_s0 = smov 128   ;;  %s1538_s16 = smov 8  }
  0x2e   :  { %62 = dma.hbm_to_vmem [thread:$0]  %s1849_s4, 1024, %s57_s14, [#allocation11], %s1537_s0, %s1537_s0, %s1538_s16  }
  0x2f   :  { %1523 = dma.done.wait [#allocation5], 128  }
  0x30   :  { %1524 = vsyncadd [#allocation5], 4294967168 }
  0x31   :  { %1525 = dma.done.wait [#allocation8], 3072  }
  0x32   :  { %1526 = vsyncadd [#allocation8], 4294964224 }
  0x33   :  { %1527 = dma.done.wait [#allocation11], 1024  }
  0x34   :  { %1528 = vsyncadd [#allocation11], 4294966272  ;;  %v1539_v0 = vmov 0.0   ;;  %v1593_v1 = vld [vmem:[#allocation9 + $0x78] sm:$0xff]  ;;  %v1595_v2 = vld [vmem:[#allocation9 + $0x70] sm:$0xff]  ;;  %vm98_vm0 = vcmask 261120   ;;  %v88_v26 = vlaneseq }
  0x35   :  { %166 = vmatprep.mubr.f32.mxu0 %v1539_v0  ;;  %260 = vmatprep.mubr.f32.mxu1 %v1539_v0  ;;  %v85_v3 = vld [vmem:[#allocation7 + $0x38] sm:$0xff]  ;;  %v1598_v4 = vld [vmem:[#allocation9 + $0x68] sm:$0xff]  ;;  %v84_v5 = vld [vmem:[#allocation7 + $0x30] sm:$0xff]  ;;  %v1540_v35 = vmov 1966171168   ;;  %vm314_vm1 = vcmask 253952  }
  0x36   :  { %212 = vmatprep.subr.mxu1 %v1593_v1  ;;  %126 = vmatprep.subr.mxu0 %v85_v3  ;;  %v1600_v6 = vld [vmem:[#allocation9 + $0x60] sm:$0xff]  ;;  %v83_v7 = vld [vmem:[#allocation7 + $0x28] sm:$0xff]  ;;  %v1603_v8 = vld [vmem:[#allocation9 + $0x58] sm:$0xff]  ;;  %v89_v27 = vshrl.u32 %v88_v26, 7  ;;  %v271_v36 = vunpack.c.l.s4 %v1540_v35  ;;  %vm316_vm2 = vcmask 516352   ;;  %vm192_vm3 = vcmask 523264  }
  0x37   :  { %213 = vmatpush1.msra.mxu1 %v1595_v2  ;;  %127 = vmatpush1.msra.mxu0 %v84_v5  ;;  %v82_v9 = vld [vmem:[#allocation7 + $0x20] sm:$0xff]  ;;  %v1606_v10 = vld [vmem:[#allocation9 + $0x50] sm:$0xff]  ;;  %v81_v11 = vld [vmem:[#allocation7 + $0x18] sm:$0xff]  ;;  %vm1542_vm4 = vmmov 0   ;;  %s1543_s21 = smov [#allocation12]  }
  0x38   :  { %214 = vmatprep.subr.mxu1 %v1598_v4  ;;  %128 = vmatprep.subr.mxu0 %v83_v7  ;;  %v1609_v12 = vld [vmem:[#allocation9 + $0x48] sm:$0xff]  ;;  %v80_v13 = vld [vmem:[#allocation7 + $0x10] sm:$0xff]  ;;  %v1612_v15 = vld [vmem:[#allocation9 + $0x40] sm:$0xff]  ;;  %v90_v28 = vsub.s32 0, %v89_v27  ;;  %v94_v30 = vsub.s32 1, %v89_v27  ;;  %v272_v39 = vunpack.c.0.s8 %v271_v36  ;;  %s1289_s22 = sshll.u32 %s1543_s21, 4  ;;  %s1290_s22 = int_to_ptr.vmem [resolvable:$true] %s1289_s22 }
  0x39   :  { %215 = vmatpush1.msra.mxu1 %v1600_v6  ;;  %129 = vmatpush1.msra.mxu0 %v82_v9  ;;  %v79_v14 = vld [vmem:[#allocation7 + $0x8] sm:$0xff]  ;;  %v78_v16 = vld [vmem:[#allocation7] sm:$0xff]  ;;  %v1615_v17 = vld [vmem:[#allocation9 + $0x38] sm:$0xff]  ;;  %s1503_s23 = scalar_lea.vmem %s1290_s22, 128  ;;  %p1508_p7 = scmp.lt.s32.totalorder %s1290_s22, %s1290_s22 }
  0x3a   :  { %216 = vmatprep.subr.mxu1 %v1603_v8  ;;  %130 = vmatprep.subr.mxu0 %v81_v11  ;;  %v77_v18 = vld [vmem:[#allocation4] sm:$0xff]  ;;  %v1618_v19 = vld [vmem:[#allocation9 + $0x30] sm:$0xff]  ;;  %v1621_v20 = vld [vmem:[#allocation9 + $0x28] sm:$0xff]  ;;  %v1681_v41 = vsub.s32 %v272_v39, %v89_v27  ;;  %p1504_p6 = scmp.ne.s32.totalorder %s1290_s22, %s1503_s23  ;;  %p1509_p8 = scmp.lt.s32.totalorder %s1503_s23, %s1503_s23 }
  0x3b   :  { %217 = vmatpush1.msra.mxu1 %v1606_v10  ;;  %131 = vmatpush1.msra.mxu0 %v80_v13  ;;  %v1624_v21 = vld [vmem:[#allocation9 + $0x20] sm:$0xff]  ;;  %v1627_v22 = vld [vmem:[#allocation9 + $0x18] sm:$0xff]  ;;  %v1631_v23 = vld [vmem:[#allocation9 + $0x10] sm:$0xff] }
  0x3c   :  { %218 = vmatprep.subr.mxu1 %v1609_v12  ;;  %132 = vmatprep.subr.mxu0 %v79_v14  ;;  %v1635_v24 = vld [vmem:[#allocation9 + $0x8] sm:$0xff]  ;;  %v1639_v25 = vld [vmem:[#allocation9] sm:$0xff]  ;;  %p1510_p9 = por %p1509_p8, %p1508_p7 }
  0x3d   :  { %219 = vmatpush1.msra.mxu1 %v1612_v15  ;;  %133 = vmatpush1.msra.mxu0 %v78_v16  ;;  %v86_v29 = vld [vmem:[%s1847_s2] sm:$0x3]  ;;  %s1541_s2 = smov 64  }
  0x3e   :  { %220 = vmatprep.subr.mxu1 %v1615_v17  ;;  %1300 = vmatmul.mubr.msk.f32.vlgmr.msra.gmra.mxu0 %vm98_vm0, %v77_v18  ;;  %v91_v31 = vrot.slane %v86_v29, %v90_v28  ;;  %v95_v32 = vrot.slane %v86_v29, %v94_v30  ;;  %p1511_p10 = pnand %p1510_p9, %p1504_p6 }
  0x3f   :  { %221 = vmatpush1.msra.mxu1 %v1618_v19  ;;  %339 = vmatprep.subr.mxu0 %v1593_v1 }
  0x40   :  { %222 = vmatprep.subr.mxu1 %v1621_v20  ;;  %340 = vmatpush1.msra.mxu0 %v1595_v2 }
  0x41   :  { %223 = vmatpush1.msra.mxu1 %v1624_v21  ;;  %341 = vmatprep.subr.mxu0 %v1598_v4 }
  0x42   :  { %224 = vmatprep.subr.mxu1 %v1627_v22  ;;  %342 = vmatpush1.msra.mxu0 %v1600_v6 }
  0x43   :  { %225 = vmatpush1.msra.mxu1 %v1631_v23  ;;  %343 = vmatprep.subr.mxu0 %v1603_v8 }
  0x44   :  { %226 = vmatprep.subr.mxu1 %v1635_v24  ;;  %344 = vmatpush1.msra.mxu0 %v1606_v10 }
  0x45   :  { %227 = vmatpush1.msra.mxu1 %v1639_v25  ;;  %345 = vmatprep.subr.mxu0 %v1609_v12 }
  0x46   :  { %261 = vmatmul.mubr.f32.vlgmr.msra.gmra.mxu1 %v1539_v0  ;;  %346 = vmatpush1.msra.mxu0 %v1612_v15 }
  0x47   :  { %347 = vmatprep.subr.mxu0 %v1615_v17  ;;  %387 = vmatprep.mubr.f32.mxu0 %v1539_v0 }
  0x48   :  { %348 = vmatpush1.msra.mxu0 %v1618_v19  ;;  %464 = vmatprep.subr.mxu1 %v1593_v1 }
  0x49   :  { %349 = vmatprep.subr.mxu0 %v1621_v20  ;;  %465 = vmatpush1.msra.mxu1 %v1595_v2 }
  0x4a   :  { %350 = vmatpush1.msra.mxu0 %v1624_v21  ;;  %466 = vmatprep.subr.mxu1 %v1598_v4 }
  0x4b   :  { %351 = vmatprep.subr.mxu0 %v1627_v22  ;;  %467 = vmatpush1.msra.mxu1 %v1600_v6 }
  0x4c   :  { %352 = vmatpush1.msra.mxu0 %v1631_v23  ;;  %468 = vmatprep.subr.mxu1 %v1603_v8 }
  0x4d   :  { %353 = vmatprep.subr.mxu0 %v1635_v24  ;;  %469 = vmatpush1.msra.mxu1 %v1606_v10 }
  0x4e   :  { %354 = vmatpush1.msra.mxu0 %v1639_v25  ;;  %470 = vmatprep.subr.mxu1 %v1609_v12 }
  0x4f   :  { %471 = vmatpush1.msra.mxu1 %v1612_v15  ;;  %512 = vmatprep.mubr.f32.mxu1 %v1539_v0 }
  0x50   :  { %472 = vmatprep.subr.mxu1 %v1615_v17  ;;  %589 = vmatprep.subr.mxu0 %v1593_v1 }
  0x51   :  { %473 = vmatpush1.msra.mxu1 %v1618_v19 }
  0x52   :  { %474 = vmatprep.subr.mxu1 %v1621_v20 }
  0x53   :  { %475 = vmatpush1.msra.mxu1 %v1624_v21 }
  0x54   :  { %476 = vmatprep.subr.mxu1 %v1627_v22 }
  0x55   :  { %477 = vmatpush1.msra.mxu1 %v1631_v23 }
  0x56   :  { %478 = vmatprep.subr.mxu1 %v1635_v24 }
  0x57   :  { %479 = vmatpush1.msra.mxu1 %v1639_v25 }
  0x58   :  { %714 = vmatprep.subr.mxu1 %v1593_v1 }
  0xfe   :  { %v168_v33 = vpop.f32.mrf.mxu0 }
  0xff   :  { %v169_v34 = vadd.f32 %v168_v33, %v91_v31 }
 0x100   :  { %v170_v37 = vpop.f32.mrf.mxu0 }
 0x101   :  { %173 = vst [vmem:[#allocation2] sm:$0xff] %v169_v34  ;;  %v171_v38 = vadd.f32 %v170_v37, %v95_v32 }
 0x103   :  { %174 = vst [vmem:[#allocation2 + $0x8] sm:$0xff] %v171_v38 }
 0x106   :  { %v262_v40 = vpop.f32.mrf.mxu1 }
 0x108   :  { %v264_v42 = vpop.f32.mrf.mxu1 }
 0x109   :  { %v269_v43 = vcombine.low %v262_v40, %v264_v42 }
 0x10a   :  { %v191_v46 = vld [vmem:[#allocation2] ss:$8 sm:$0x3]  ;;  %v319_v11 = vld [vmem:[#allocation2 + $0x1] ss:$8 sm:$0x3] }
 0x10b   :  { %v276_v44 = vrot.slane %v269_v43, %v1681_v41 }
 0x10d   :  { %v283_v45 = vrot.slane %v276_v44, %v1681_v41  ;;  %v444_v44 = vld [vmem:[#allocation2 + $0x2] ss:$8 sm:$0x3] }
 0x10f   :  { %v285_v47 = vadd.f32 %v283_v45, %v191_v46 }
 0x111   :  { %293 = vrot.lane.b32.xlu0 %v285_v47, %s1541_s2  ;;  %v1301_v48 = vmul.f32 -1.442695, %v285_v47 }
 0x113   :  { %1359 = vpow2.f32 %v1301_v48 }
 0x120   :  { %v1360_v49 = vpop.eup %1359 }
 0x121   :  { %v289_v50 = vadd.f32 1.0, %v1360_v49 }
 0x123   :  { %1361 = vrcp.f32 %v289_v50 }
 0x130   :  { %v1362_v53 = vpop.eup %1361 }
 0x131   :  { %v298_v56 = vmul.f32 0.0, %v1362_v53  ;;  %v307_v60 = vrot.slane %v1362_v53, 1 }
 0x183   :  { %v294_v51 = vpop.permute.xlu0 %293 }
 0x184   :  { %v295_v52 = vrot.slane %v294_v51, 1 }
 0x186   :  { %1363 = vtanh.f32 %v295_v52 }
 0x193   :  { %v1364_v54 = vpop.eup %1363 }
 0x194   :  { %v299_v55 = vmul.f32 %v1364_v54, %v1362_v53 }
 0x196   :  { %301 = vrot.lane.b32.xlu0 %v299_v55, %s1541_s2 }
 0x208   :  { %v302_v57 = vpop.permute.xlu0 %301 }
 0x209   :  { %v304_v58 = vadd.f32 %v302_v57, %v298_v56 }
 0x20b   :  { %1365 = vtanh.f32 %v304_v58 }
 0x218   :  { %v1366_v59 = vpop.eup %1365 }
 0x219   :  { %310 = vrot.lane.b32.xlu1 %v1366_v59, %s1541_s2 }
 0x28b   :  { %v311_v61 = vpop.permute.xlu1 %310 }
 0x28c   :  { %v313_v62 = vmul.f32 %v311_v61, %v307_v60 }
 0x28e   :  { %315 = vst.msk [vmem:[#allocation3] sm:$0x1] %vm314_vm1, %v313_v62  ;;  %1302 = vmatmul.mubr.msk.f32.vlgmr.msra.gmra.mxu0 %vm192_vm3, %v313_v62 }
 0x28f   :  { %317 = vst.msk [vmem:[#allocation3 + $0x7] sm:$0x1] %vm316_vm2, %v313_v62  ;;  %590 = vmatpush1.msra.mxu0 %v1595_v2  ;;  %637 = vmatprep.mubr.f32.mxu0 %v1539_v0 }
 0x290   :  { %591 = vmatprep.subr.mxu0 %v1598_v4 }
 0x291   :  { %592 = vmatpush1.msra.mxu0 %v1600_v6 }
 0x292   :  { %593 = vmatprep.subr.mxu0 %v1603_v8 }
 0x293   :  { %594 = vmatpush1.msra.mxu0 %v1606_v10 }
 0x294   :  { %595 = vmatprep.subr.mxu0 %v1609_v12 }
 0x295   :  { %596 = vmatpush1.msra.mxu0 %v1612_v15 }
 0x296   :  { %597 = vmatprep.subr.mxu0 %v1615_v17 }
 0x297   :  { %598 = vmatpush1.msra.mxu0 %v1618_v19 }
 0x298   :  { %599 = vmatprep.subr.mxu0 %v1621_v20 }
 0x299   :  { %600 = vmatpush1.msra.mxu0 %v1624_v21 }
 0x29a   :  { %601 = vmatprep.subr.mxu0 %v1627_v22 }
 0x29b   :  { %602 = vmatpush1.msra.mxu0 %v1631_v23 }
 0x29c   :  { %603 = vmatprep.subr.mxu0 %v1635_v24 }
 0x29d   :  { %604 = vmatpush1.msra.mxu0 %v1639_v25 }
 0x29e   :  { %839 = vmatprep.subr.mxu0 %v1593_v1 }
 0x34e   :  { %v389_v63 = vpop.f32.mrf.mxu0 }
 0x350   :  { %v391_v3 = vpop.f32.mrf.mxu0 }
 0x351   :  { %v396_v5 = vcombine.low %v389_v63, %v391_v3 }
 0x353   :  { %v403_v7 = vrot.slane %v396_v5, %v1681_v41 }
 0x355   :  { %v410_v9 = vrot.slane %v403_v7, %v1681_v41  ;;  %v569_v7 = vld [vmem:[#allocation2 + $0x3] ss:$8 sm:$0x3] }
 0x357   :  { %v412_v13 = vadd.f32 %v410_v9, %v319_v11 }
 0x359   :  { %420 = vrot.lane.b32.xlu1 %v412_v13, %s1541_s2  ;;  %v1303_v14 = vmul.f32 -1.442695, %v412_v13 }
 0x35b   :  { %1367 = vpow2.f32 %v1303_v14 }
 0x368   :  { %v1368_v16 = vpop.eup %1367 }
 0x369   :  { %v416_v18 = vadd.f32 1.0, %v1368_v16 }
 0x36b   :  { %1369 = vrcp.f32 %v416_v18 }
 0x378   :  { %v1370_v28 = vpop.eup %1369 }
 0x379   :  { %v425_v31 = vmul.f32 %v1370_v28, %v304_v58  ;;  %v434_v35 = vrot.slane %v1370_v28, 1 }
 0x3cb   :  { %v421_v26 = vpop.permute.xlu1 %420 }
 0x3cc   :  { %v422_v27 = vrot.slane %v421_v26, 1 }
 0x3ce   :  { %1371 = vtanh.f32 %v422_v27 }
 0x3db   :  { %v1372_v29 = vpop.eup %1371 }
 0x3dc   :  { %v426_v30 = vmul.f32 %v1372_v29, %v1370_v28 }
 0x3de   :  { %428 = vrot.lane.b32.xlu0 %v426_v30, %s1541_s2 }
 0x450   :  { %v429_v32 = vpop.permute.xlu0 %428 }
 0x451   :  { %v431_v33 = vadd.f32 %v429_v32, %v425_v31 }
 0x453   :  { %1373 = vtanh.f32 %v431_v33 }
 0x460   :  { %v1374_v34 = vpop.eup %1373 }
 0x461   :  { %437 = vrot.lane.b32.xlu1 %v1374_v34, %s1541_s2 }
 0x4d3   :  { %v438_v36 = vpop.permute.xlu1 %437 }
 0x4d4   :  { %v440_v37 = vmul.f32 %v438_v36, %v434_v35 }
 0x4d6   :  { %441 = vst.msk [vmem:[#allocation3 + $0x1] sm:$0x1] %vm314_vm1, %v440_v37  ;;  %1304 = vmatmul.mubr.msk.f32.vlgmr.msra.gmra.mxu1 %vm192_vm3, %v440_v37 }
 0x4d7   :  { %442 = vst.msk [vmem:[#allocation3 + $0x6] sm:$0x1] %vm316_vm2, %v440_v37  ;;  %715 = vmatpush1.msra.mxu1 %v1595_v2  ;;  %762 = vmatprep.mubr.f32.mxu1 %v1539_v0 }
 0x4d8   :  { %716 = vmatprep.subr.mxu1 %v1598_v4 }
 0x4d9   :  { %717 = vmatpush1.msra.mxu1 %v1600_v6 }
 0x4da   :  { %718 = vmatprep.subr.mxu1 %v1603_v8 }
 0x4db   :  { %719 = vmatpush1.msra.mxu1 %v1606_v10 }
 0x4dc   :  { %720 = vmatprep.subr.mxu1 %v1609_v12 }
 0x4dd   :  { %721 = vmatpush1.msra.mxu1 %v1612_v15 }
 0x4de   :  { %722 = vmatprep.subr.mxu1 %v1615_v17 }
 0x4df   :  { %723 = vmatpush1.msra.mxu1 %v1618_v19 }
 0x4e0   :  { %724 = vmatprep.subr.mxu1 %v1621_v20 }
 0x4e1   :  { %725 = vmatpush1.msra.mxu1 %v1624_v21 }
 0x4e2   :  { %726 = vmatprep.subr.mxu1 %v1627_v22 }
 0x4e3   :  { %727 = vmatpush1.msra.mxu1 %v1631_v23 }
 0x4e4   :  { %728 = vmatprep.subr.mxu1 %v1635_v24 }
 0x4e5   :  { %729 = vmatpush1.msra.mxu1 %v1639_v25 }
 0x4e6   :  { %964 = vmatprep.subr.mxu1 %v1593_v1 }
 0x596   :  { %v514_v38 = vpop.f32.mrf.mxu1 }
 0x598   :  { %v516_v39 = vpop.f32.mrf.mxu1 }
 0x599   :  { %v521_v40 = vcombine.low %v514_v38, %v516_v39 }
 0x59b   :  { %v528_v42 = vrot.slane %v521_v40, %v1681_v41  ;;  %v694_v40 = vld [vmem:[#allocation2 + $0x4] ss:$8 sm:$0x3] }
 0x59d   :  { %v535_v43 = vrot.slane %v528_v42, %v1681_v41 }
 0x59f   :  { %v537_v45 = vadd.f32 %v535_v43, %v444_v44 }
 0x5a1   :  { %545 = vrot.lane.b32.xlu0 %v537_v45, %s1541_s2  ;;  %v1305_v46 = vmul.f32 -1.442695, %v537_v45 }
 0x5a3   :  { %1375 = vpow2.f32 %v1305_v46 }
 0x5b0   :  { %v1376_v47 = vpop.eup %1375 }
 0x5b1   :  { %v541_v48 = vadd.f32 1.0, %v1376_v47 }
 0x5b3   :  { %1377 = vrcp.f32 %v541_v48 }
 0x5c0   :  { %v1378_v51 = vpop.eup %1377 }
 0x5c1   :  { %v550_v54 = vmul.f32 %v1378_v51, %v431_v33  ;;  %v559_v58 = vrot.slane %v1378_v51, 1 }
 0x613   :  { %v546_v49 = vpop.permute.xlu0 %545 }
 0x614   :  { %v547_v50 = vrot.slane %v546_v49, 1 }
 0x616   :  { %1379 = vtanh.f32 %v547_v50 }
 0x623   :  { %v1380_v52 = vpop.eup %1379 }
 0x624   :  { %v551_v53 = vmul.f32 %v1380_v52, %v1378_v51 }
 0x626   :  { %553 = vrot.lane.b32.xlu1 %v551_v53, %s1541_s2 }
 0x698   :  { %v554_v55 = vpop.permute.xlu1 %553 }
 0x699   :  { %v556_v56 = vadd.f32 %v554_v55, %v550_v54 }
 0x69b   :  { %1381 = vtanh.f32 %v556_v56 }
 0x6a8   :  { %v1382_v57 = vpop.eup %1381 }
 0x6a9   :  { %562 = vrot.lane.b32.xlu0 %v1382_v57, %s1541_s2 }
 0x71b   :  { %v563_v59 = vpop.permute.xlu0 %562 }
 0x71c   :  { %v565_v60 = vmul.f32 %v563_v59, %v559_v58 }
 0x71e   :  { %566 = vst.msk [vmem:[#allocation3 + $0x2] sm:$0x1] %vm314_vm1, %v565_v60  ;;  %1306 = vmatmul.mubr.msk.f32.vlgmr.msra.gmra.mxu0 %vm192_vm3, %v565_v60 }
 0x71f   :  { %567 = vst.msk [vmem:[#allocation3 + $0x5] sm:$0x1] %vm316_vm2, %v565_v60  ;;  %840 = vmatpush1.msra.mxu0 %v1595_v2  ;;  %887 = vmatprep.mubr.f32.mxu0 %v1539_v0 }
 0x720   :  { %841 = vmatprep.subr.mxu0 %v1598_v4 }
 0x721   :  { %842 = vmatpush1.msra.mxu0 %v1600_v6 }
 0x722   :  { %843 = vmatprep.subr.mxu0 %v1603_v8 }
 0x723   :  { %844 = vmatpush1.msra.mxu0 %v1606_v10 }
 0x724   :  { %845 = vmatprep.subr.mxu0 %v1609_v12 }
 0x725   :  { %846 = vmatpush1.msra.mxu0 %v1612_v15 }
 0x726   :  { %847 = vmatprep.subr.mxu0 %v1615_v17 }
 0x727   :  { %848 = vmatpush1.msra.mxu0 %v1618_v19 }
 0x728   :  { %849 = vmatprep.subr.mxu0 %v1621_v20 }
 0x729   :  { %850 = vmatpush1.msra.mxu0 %v1624_v21 }
 0x72a   :  { %851 = vmatprep.subr.mxu0 %v1627_v22 }
 0x72b   :  { %852 = vmatpush1.msra.mxu0 %v1631_v23 }
 0x72c   :  { %853 = vmatprep.subr.mxu0 %v1635_v24 }
 0x72d   :  { %854 = vmatpush1.msra.mxu0 %v1639_v25 }
 0x72e   :  { %1089 = vmatprep.subr.mxu0 %v1593_v1 }
 0x7de   :  { %v639_v61 = vpop.f32.mrf.mxu0 }
 0x7e0   :  { %v641_v62 = vpop.f32.mrf.mxu0 }
 0x7e1   :  { %v646_v63 = vcombine.low %v639_v61, %v641_v62 }
 0x7e3   :  { %v653_v3 = vrot.slane %v646_v63, %v1681_v41 }
 0x7e5   :  { %v660_v5 = vrot.slane %v653_v3, %v1681_v41 }
 0x7e7   :  { %v662_v9 = vadd.f32 %v660_v5, %v569_v7 }
 0x7e9   :  { %670 = vrot.lane.b32.xlu1 %v662_v9, %s1541_s2  ;;  %v1307_v11 = vmul.f32 -1.442695, %v662_v9 }
 0x7eb   :  { %1383 = vpow2.f32 %v1307_v11 }
 0x7f8   :  { %v1384_v13 = vpop.eup %1383 }
 0x7f9   :  { %v666_v14 = vadd.f32 1.0, %v1384_v13 }
 0x7fb   :  { %1385 = vrcp.f32 %v666_v14  ;;  %v944_v14 = vld [vmem:[#allocation2 + $0x6] ss:$8 sm:$0x3] }
 0x808   :  { %v1386_v1 = vpop.eup %1385 }
 0x809   :  { %v675_v28 = vmul.f32 %v1386_v1, %v556_v56  ;;  %v684_v32 = vrot.slane %v1386_v1, 1 }
 0x85b   :  { %v671_v16 = vpop.permute.xlu1 %670 }
 0x85c   :  { %v672_v18 = vrot.slane %v671_v16, 1 }
 0x85e   :  { %1387 = vtanh.f32 %v672_v18 }
 0x86b   :  { %v1388_v26 = vpop.eup %1387 }
 0x86c   :  { %v676_v27 = vmul.f32 %v1388_v26, %v1386_v1 }
 0x86e   :  { %678 = vrot.lane.b32.xlu0 %v676_v27, %s1541_s2 }
 0x8e0   :  { %v679_v29 = vpop.permute.xlu0 %678 }
 0x8e1   :  { %v681_v30 = vadd.f32 %v679_v29, %v675_v28 }
 0x8e3   :  { %1389 = vtanh.f32 %v681_v30 }
 0x8f0   :  { %v1390_v31 = vpop.eup %1389 }
 0x8f1   :  { %687 = vrot.lane.b32.xlu1 %v1390_v31, %s1541_s2 }
 0x963   :  { %v688_v33 = vpop.permute.xlu1 %687 }
 0x964   :  { %v690_v34 = vmul.f32 %v688_v33, %v684_v32 }
 0x966   :  { %691 = vst.msk [vmem:[#allocation3 + $0x3] sm:$0x1] %vm314_vm1, %v690_v34  ;;  %1308 = vmatmul.mubr.msk.f32.vlgmr.msra.gmra.mxu1 %vm192_vm3, %v690_v34 }
 0x967   :  { %692 = vst.msk [vmem:[#allocation3 + $0x4] sm:$0x1] %vm316_vm2, %v690_v34  ;;  %965 = vmatpush1.msra.mxu1 %v1595_v2  ;;  %1012 = vmatprep.mubr.f32.mxu1 %v1539_v0 }
 0x968   :  { %966 = vmatprep.subr.mxu1 %v1598_v4 }
 0x969   :  { %967 = vmatpush1.msra.mxu1 %v1600_v6 }
 0x96a   :  { %968 = vmatprep.subr.mxu1 %v1603_v8 }
 0x96b   :  { %969 = vmatpush1.msra.mxu1 %v1606_v10 }
 0x96c   :  { %970 = vmatprep.subr.mxu1 %v1609_v12 }
 0x96d   :  { %971 = vmatpush1.msra.mxu1 %v1612_v15 }
 0x96e   :  { %972 = vmatprep.subr.mxu1 %v1615_v17 }
 0x96f   :  { %973 = vmatpush1.msra.mxu1 %v1618_v19 }
 0x970   :  { %974 = vmatprep.subr.mxu1 %v1621_v20 }
 0x971   :  { %975 = vmatpush1.msra.mxu1 %v1624_v21 }
 0x972   :  { %976 = vmatprep.subr.mxu1 %v1627_v22 }
 0x973   :  { %977 = vmatpush1.msra.mxu1 %v1631_v23 }
 0x974   :  { %978 = vmatprep.subr.mxu1 %v1635_v24 }
 0x975   :  { %979 = vmatpush1.msra.mxu1 %v1639_v25 }
 0x976   :  { %1327 = vmatprep.subr.mxu1 %v1539_v0 }
 0xa26   :  { %v764_v35 = vpop.f32.mrf.mxu1 }
 0xa28   :  { %v766_v36 = vpop.f32.mrf.mxu1 }
 0xa29   :  { %v771_v37 = vcombine.low %v764_v35, %v766_v36 }
 0xa2b   :  { %v778_v38 = vrot.slane %v771_v37, %v1681_v41 }
 0xa2d   :  { %v785_v39 = vrot.slane %v778_v38, %v1681_v41 }
 0xa2f   :  { %v787_v42 = vadd.f32 %v785_v39, %v694_v40 }
 0xa31   :  { %795 = vrot.lane.b32.xlu0 %v787_v42, %s1541_s2  ;;  %v1309_v43 = vmul.f32 -1.442695, %v787_v42 }
 0xa33   :  { %1391 = vpow2.f32 %v1309_v43 }
 0xa40   :  { %v1392_v44 = vpop.eup %1391 }
 0xa41   :  { %v791_v45 = vadd.f32 1.0, %v1392_v44 }
 0xa43   :  { %1393 = vrcp.f32 %v791_v45  ;;  %v1069_v45 = vld [vmem:[#allocation2 + $0x7] ss:$8 sm:$0x3] }
 0xa50   :  { %v1394_v48 = vpop.eup %1393 }
 0xa51   :  { %v800_v51 = vmul.f32 %v1394_v48, %v681_v30  ;;  %v809_v55 = vrot.slane %v1394_v48, 1 }
 0xaa3   :  { %v796_v46 = vpop.permute.xlu0 %795 }
 0xaa4   :  { %v797_v47 = vrot.slane %v796_v46, 1 }
 0xaa6   :  { %1395 = vtanh.f32 %v797_v47 }
 0xab3   :  { %v1396_v49 = vpop.eup %1395 }
 0xab4   :  { %v801_v50 = vmul.f32 %v1396_v49, %v1394_v48 }
 0xab6   :  { %803 = vrot.lane.b32.xlu1 %v801_v50, %s1541_s2 }
 0xb28   :  { %v804_v52 = vpop.permute.xlu1 %803 }
 0xb29   :  { %v806_v53 = vadd.f32 %v804_v52, %v800_v51 }
 0xb2b   :  { %1397 = vtanh.f32 %v806_v53 }
 0xb38   :  { %v1398_v54 = vpop.eup %1397 }
 0xb39   :  { %812 = vrot.lane.b32.xlu0 %v1398_v54, %s1541_s2 }
 0xbab   :  { %v813_v56 = vpop.permute.xlu0 %812 }
 0xbac   :  { %v815_v57 = vmul.f32 %v813_v56, %v809_v55  ;;  %v1201_v55 = vld [vmem:[#allocation10 + $0x38] sm:$0xff]  ;;  %v1200_v56 = vld [vmem:[#allocation10 + $0x30] sm:$0xff] }
 0xbae   :  { %816 = vst.msk [vmem:[#allocation3 + $0x4] sm:$0x1] %vm314_vm1, %v815_v57  ;;  %1310 = vmatmul.mubr.msk.f32.vlgmr.msra.gmra.mxu0 %vm192_vm3, %v815_v57 }
 0xbaf   :  { %817 = vst.msk [vmem:[#allocation3 + $0x3] sm:$0x1] %vm316_vm2, %v815_v57  ;;  %1090 = vmatpush1.msra.mxu0 %v1595_v2  ;;  %1137 = vmatprep.mubr.f32.mxu0 %v1539_v0 }
 0xbb0   :  { %1091 = vmatprep.subr.mxu0 %v1598_v4 }
 0xbb1   :  { %1092 = vmatpush1.msra.mxu0 %v1600_v6 }
 0xbb2   :  { %1093 = vmatprep.subr.mxu0 %v1603_v8 }
 0xbb3   :  { %1094 = vmatpush1.msra.mxu0 %v1606_v10 }
 0xbb4   :  { %1095 = vmatprep.subr.mxu0 %v1609_v12  ;;  %v819_v12 = vld [vmem:[#allocation2 + $0x5] ss:$8 sm:$0x3] }
 0xbb5   :  { %1096 = vmatpush1.msra.mxu0 %v1612_v15 }
 0xbb6   :  { %1097 = vmatprep.subr.mxu0 %v1615_v17 }
 0xbb7   :  { %1098 = vmatpush1.msra.mxu0 %v1618_v19 }
 0xbb8   :  { %1099 = vmatprep.subr.mxu0 %v1621_v20 }
 0xbb9   :  { %1100 = vmatpush1.msra.mxu0 %v1624_v21 }
 0xbba   :  { %1101 = vmatprep.subr.mxu0 %v1627_v22 }
 0xbbb   :  { %1102 = vmatpush1.msra.mxu0 %v1631_v23 }
 0xbbc   :  { %1103 = vmatprep.subr.mxu0 %v1635_v24 }
 0xbbd   :  { %1104 = vmatpush1.msra.mxu0 %v1639_v25 }
 0xc6e   :  { %v889_v2 = vpop.f32.mrf.mxu0 }
 0xc70   :  { %v891_v4 = vpop.f32.mrf.mxu0 }
 0xc71   :  { %v896_v6 = vcombine.low %v889_v2, %v891_v4 }
 0xc73   :  { %v903_v8 = vrot.slane %v896_v6, %v1681_v41  ;;  %v1198_v6 = vld [vmem:[#allocation10 + $0x20] sm:$0xff] }
 0xc75   :  { %v910_v10 = vrot.slane %v903_v8, %v1681_v41  ;;  %v1197_v8 = vld [vmem:[#allocation10 + $0x18] sm:$0xff] }
 0xc77   :  { %v912_v15 = vadd.f32 %v910_v10, %v819_v12  ;;  %v1196_v10 = vld [vmem:[#allocation10 + $0x10] sm:$0xff]  ;;  %v1195_v12 = vld [vmem:[#allocation10 + $0x8] sm:$0xff] }
 0xc79   :  { %920 = vrot.lane.b32.xlu1 %v912_v15, %s1541_s2  ;;  %v1311_v17 = vmul.f32 -1.442695, %v912_v15  ;;  %v1194_v15 = vld [vmem:[#allocation10] sm:$0xff] }
 0xc7b   :  { %1399 = vpow2.f32 %v1311_v17 }
 0xc88   :  { %v1400_v19 = vpop.eup %1399 }
 0xc89   :  { %v916_v20 = vadd.f32 1.0, %v1400_v19 }
 0xc8b   :  { %1401 = vrcp.f32 %v916_v20 }
 0xc98   :  { %v1402_v23 = vpop.eup %1401 }
 0xc99   :  { %v925_v58 = vmul.f32 %v1402_v23, %v806_v53  ;;  %v934_v62 = vrot.slane %v1402_v23, 1 }
 0xceb   :  { %v921_v21 = vpop.permute.xlu1 %920 }
 0xcec   :  { %v922_v22 = vrot.slane %v921_v21, 1 }
 0xcee   :  { %1403 = vtanh.f32 %v922_v22 }
 0xcfb   :  { %v1404_v24 = vpop.eup %1403 }
 0xcfc   :  { %v926_v25 = vmul.f32 %v1404_v24, %v1402_v23  ;;  %v1316_v23 = vld [vmem:[%s1850_s5] ss:$0 sm:$0xff] }
 0xcfe   :  { %928 = vrot.lane.b32.xlu0 %v926_v25, %s1541_s2 }
 0xd70   :  { %v929_v59 = vpop.permute.xlu0 %928 }
 0xd71   :  { %v931_v60 = vadd.f32 %v929_v59, %v925_v58 }
 0xd73   :  { %1405 = vtanh.f32 %v931_v60 }
 0xd80   :  { %v1406_v61 = vpop.eup %1405 }
 0xd81   :  { %937 = vrot.lane.b32.xlu1 %v1406_v61, %s1541_s2 }
 0xdf3   :  { %v938_v63 = vpop.permute.xlu1 %937 }
 0xdf4   :  { %v940_v3 = vmul.f32 %v938_v63, %v934_v62 }
 0xdf6   :  { %941 = vst.msk [vmem:[#allocation3 + $0x5] sm:$0x1] %vm314_vm1, %v940_v3  ;;  %1312 = vmatmul.mubr.msk.f32.vlgmr.msra.gmra.mxu1 %vm192_vm3, %v940_v3 }
 0xdf7   :  { %942 = vst.msk [vmem:[#allocation3 + $0x2] sm:$0x1] %vm316_vm2, %v940_v3  ;;  %1328 = vmatpush3.msra.mxu1 %v1201_v55  ;;  %1343 = vmatprep.mubr.msk.f32.mxu1 %vm1542_vm4, %v1539_v0 }
 0xdf8   :  { %1329 = vmatprep.subr.mxu1 %v1539_v0 }
 0xdf9   :  { %1330 = vmatpush3.msra.mxu1 %v1200_v56 }
 0xdfa   :  { %1331 = vmatprep.subr.mxu1 %v1539_v0 }
 0xeb6   :  { %v1014_v5 = vpop.f32.mrf.mxu1 }
 0xeb8   :  { %v1016_v7 = vpop.f32.mrf.mxu1 }
 0xeb9   :  { %v1021_v9 = vcombine.low %v1014_v5, %v1016_v7 }
 0xebb   :  { %v1028_v11 = vrot.slane %v1021_v9, %v1681_v41 }
 0xebd   :  { %v1035_v13 = vrot.slane %v1028_v11, %v1681_v41 }
 0xebf   :  { %v1037_v16 = vadd.f32 %v1035_v13, %v944_v14 }
 0xec1   :  { %1045 = vrot.lane.b32.xlu0 %v1037_v16, %s1541_s2  ;;  %v1313_v18 = vmul.f32 -1.442695, %v1037_v16 }
 0xec3   :  { %1407 = vpow2.f32 %v1313_v18 }
 0xed0   :  { %v1408_v1 = vpop.eup %1407 }
 0xed1   :  { %v1041_v26 = vadd.f32 1.0, %v1408_v1 }
 0xed3   :  { %1409 = vrcp.f32 %v1041_v26 }
 0xee0   :  { %v1410_v29 = vpop.eup %1409 }
 0xee1   :  { %v1050_v32 = vmul.f32 %v1410_v29, %v931_v60  ;;  %v1059_v36 = vrot.slane %v1410_v29, 1 }
 0xf33   :  { %v1046_v27 = vpop.permute.xlu0 %1045 }
 0xf34   :  { %v1047_v28 = vrot.slane %v1046_v27, 1 }
 0xf36   :  { %1411 = vtanh.f32 %v1047_v28 }
 0xf43   :  { %v1412_v30 = vpop.eup %1411 }
 0xf44   :  { %v1051_v31 = vmul.f32 %v1412_v30, %v1410_v29 }
 0xf46   :  { %1053 = vrot.lane.b32.xlu1 %v1051_v31, %s1541_s2 }
 0xfb8   :  { %v1054_v33 = vpop.permute.xlu1 %1053 }
 0xfb9   :  { %v1056_v34 = vadd.f32 %v1054_v33, %v1050_v32 }
 0xfbb   :  { %1413 = vtanh.f32 %v1056_v34 }
 0xfc8   :  { %v1414_v35 = vpop.eup %1413 }
 0xfc9   :  { %1062 = vrot.lane.b32.xlu0 %v1414_v35, %s1541_s2 }
0x103b   :  { %v1063_v37 = vpop.permute.xlu0 %1062 }
0x103c   :  { %v1065_v38 = vmul.f32 %v1063_v37, %v1059_v36 }
0x103e   :  { %1066 = vst.msk [vmem:[#allocation3 + $0x6] sm:$0x1] %vm314_vm1, %v1065_v38  ;;  %1314 = vmatmul.mubr.msk.f32.vlgmr.msra.gmra.mxu0 %vm192_vm3, %v1065_v38 }
0x103f   :  { %1067 = vst.msk [vmem:[#allocation3 + $0x1] sm:$0x1] %vm316_vm2, %v1065_v38 }
0x10fe   :  { %v1139_v39 = vpop.f32.mrf.mxu0 }
0x1100   :  { %v1141_v40 = vpop.f32.mrf.mxu0 }
0x1101   :  { %v1146_v42 = vcombine.low %v1139_v39, %v1141_v40 }
0x1103   :  { %v1153_v43 = vrot.slane %v1146_v42, %v1681_v41 }
0x1105   :  { %v1160_v44 = vrot.slane %v1153_v43, %v1681_v41  ;;  %v1199_v41 = vld [vmem:[#allocation10 + $0x28] sm:$0xff] }
0x1106   :  { %1332 = vmatpush3.msra.mxu1 %v1199_v41 }
0x1107   :  { %v1162_v46 = vadd.f32 %v1160_v44, %v1069_v45  ;;  %1333 = vmatprep.subr.mxu1 %v1539_v0 }
0x1108   :  { %1334 = vmatpush3.msra.mxu1 %v1198_v6 }
0x1109   :  { %1170 = vrot.lane.b32.xlu1 %v1162_v46, %s1541_s2  ;;  %v1315_v47 = vmul.f32 -1.442695, %v1162_v46  ;;  %1335 = vmatprep.subr.mxu1 %v1539_v0 }
0x110a   :  { %1336 = vmatpush3.msra.mxu1 %v1197_v8 }
0x110b   :  { %1415 = vpow2.f32 %v1315_v47  ;;  %1337 = vmatprep.subr.mxu1 %v1539_v0 }
0x110c   :  { %1338 = vmatpush3.msra.mxu1 %v1196_v10 }
0x110d   :  { %1339 = vmatprep.subr.mxu1 %v1539_v0 }
0x110e   :  { %1340 = vmatpush3.msra.mxu1 %v1195_v12 }
0x110f   :  { %1341 = vmatprep.subr.mxu1 %v1539_v0 }
0x1110   :  { %1342 = vmatpush3.msra.mxu1 %v1194_v15 }
0x1118   :  { %v1416_v48 = vpop.eup %1415 }
0x1119   :  { %v1166_v49 = vadd.f32 1.0, %v1416_v48 }
0x111b   :  { %1417 = vrcp.f32 %v1166_v49 }
0x1128   :  { %v1418_v52 = vpop.eup %1417 }
0x1129   :  { %v1175_v57 = vmul.f32 %v1418_v52, %v1056_v34  ;;  %v1184_v19 = vrot.slane %v1418_v52, 1 }
0x117b   :  { %v1171_v50 = vpop.permute.xlu1 %1170 }
0x117c   :  { %v1172_v51 = vrot.slane %v1171_v50, 1 }
0x117e   :  { %1419 = vtanh.f32 %v1172_v51 }
0x118b   :  { %v1420_v53 = vpop.eup %1419 }
0x118c   :  { %v1176_v54 = vmul.f32 %v1420_v53, %v1418_v52 }
0x118e   :  { %1178 = vrot.lane.b32.xlu0 %v1176_v54, %s1541_s2 }
0x1200   :  { %v1179_v2 = vpop.permute.xlu0 %1178 }
0x1201   :  { %v1181_v4 = vadd.f32 %v1179_v2, %v1175_v57 }
0x1203   :  { %1421 = vtanh.f32 %v1181_v4 }
0x1210   :  { %v1422_v17 = vpop.eup %1421 }
0x1211   :  { %1187 = vrot.lane.b32.xlu1 %v1422_v17, %s1541_s2 }
0x1283   :  { %v1188_v20 = vpop.permute.xlu1 %1187 }
0x1284   :  { %v1190_v21 = vmul.f32 %v1188_v20, %v1184_v19 }
0x1286   :  { %1191 = vst.msk [vmem:[#allocation3 + $0x7] sm:$0x1] %vm314_vm1, %v1190_v21 }
0x1287   :  { %1192 = vst.msk [vmem:[#allocation3] sm:$0x1] %vm316_vm2, %v1190_v21 }
0x128e   :  { %v1193_v22 = vld [vmem:[#allocation3] sm:$0xff] }
0x128f   :  { %1344 = vmatmul.mubr.msk.f32.vlgmr.msra.gmra.mxu1 %vm192_vm3, %v1193_v22 }
0x134f   :  { %v1278_v0 = vpop.f32.mrf.mxu1 }
0x1350   :  { %v1279_v24 = vadd.f32 %v1316_v23, %v1278_v0 }
0x1351   :  { %v1345_v25 = vpop.f32.mrf.mxu1 }
0x1352   :  { %1282 = vst [vmem:[#allocation12] sm:$0xff] %v1279_v24 }
0x1353   :  { %1514 = shalt.err (!%p1511_p10)
}
0x1354   :  { %1292 = dma.vmem_to_hbm [thread:$0]  %s1290_s22, 128, %s1851_s6, [#allocation6]  }
0x1355   :  { %1529 = dma.done.wait [#allocation6], 128  }
0x1356   :  { %1530 = vsyncadd [#allocation6], 4294967168 }
0x1357   :  { %1296 = vsyncpa [#allocation5], 1 }
0x1358   :  { %1297 = vsyncpa [#allocation8], 1 }
0x1359   :  { %1298 = vsyncpa [#allocation11], 1 }
0x135a   :  { %1299 = vsyncpa [#allocation6], 1 }

</bundles_post_ra>
